<compile_context>
chip_gen: v7x
topology: tpu7x:2x2x1
jax: 0.10.0
libtpu: 0.0.40
codegen_flags: <defaults>
</compile_context>

<pallas_src>
import math

import jax
import jax.numpy as jnp
from jax.experimental import pallas as pl
from jax.experimental.pallas import tpu as pltpu

HID = 32          # RNN input size ("hidden" ctor arg)
RNN_H = 128       # RNN hidden size
NCLS = 10         # Linear(128, 10) classes
NCLS_PAD = 128    # lane-dense padded class dimension
NEG_BIG = -1e30   # bias value for padded class lanes (exp() underflows to exactly 0)


def _round_up(n, m):
    return ((n + m - 1) // m) * m


def rnn_detect_kernel(x_ref, w0_ref, b0_ref, w1_ref, b1_ref, wout_ref, bout_ref, out_ref):
    f32 = jnp.float32
    x = x_ref[...]                                                        # (TB, HID)

    # RNN layer 0, both directions fused: y0 = concat([h0f, h0b])          (TB, 256)
    y0 = jnp.tanh(jnp.dot(x, w0_ref[...], preferred_element_type=f32) + b0_ref[...])

    # RNN layer 1, both directions fused: y1 = concat([h1f, h1b])          (TB, 256)
    y1 = jnp.tanh(jnp.dot(y0, w1_ref[...], preferred_element_type=f32) + b1_ref[...])

    # AvgPool2d((1,2)) + Linear(128,10) folded into one (256,128) lane-padded weight.
    logits = jnp.dot(y1, wout_ref[...], preferred_element_type=f32) + bout_ref[...]

    # softmax(dim=-1), numerically stable; padded lanes carry -1e30 bias -> exp == 0,
    # so the distribution over the first 10 lanes is identical to the unpadded softmax.
    m = jnp.max(logits, axis=-1, keepdims=True)
    e = jnp.exp(logits - m)
    s = jnp.sum(e, axis=-1, keepdims=True)
    out_ref[...] = e * pl.reciprocal(s, approx=False)


def rnn_detect_forward(h1, fused, *, tb=None, tb_cap=1024):
    """Run the fused kernel. `tb` (batch tile, multiple of 8) is adaptive by default:
    roughly half the padded batch (so a v7x megacore gets >=2 grid steps), capped at
    `tb_cap` to stay well inside VMEM on every generation."""
    B = h1.shape[0]
    if tb is None:
        padded8 = _round_up(B, 8)
        half = _round_up((padded8 + 1) // 2, 8)   # aim for >= 2 grid steps when possible
        tb = min(max(half, 8), tb_cap)

    padded = _round_up(B, tb)
    if padded != B:
        h1 = jnp.pad(h1, ((0, padded - B), (0, 0)))

    def wmap(i):            # weights/biases: constant block index -> VMEM-resident
        return (0, 0)

    def wspec(shape):       # single-buffered: constant index => double-buffering is waste
        return pl.BlockSpec(shape, wmap, pipeline_mode=pl.Buffered(1))

    out = pl.pallas_call(
        rnn_detect_kernel,
        out_shape=jax.ShapeDtypeStruct((padded, NCLS_PAD), jnp.float32),
        grid_spec=pltpu.PrefetchScalarGridSpec(
            num_scalar_prefetch=0,
            grid=(padded // tb,),
            in_specs=[
                pl.BlockSpec((tb, HID), lambda i: (i, 0)),             # x tile
                wspec((HID, 2 * RNN_H)),                               # W0       (32, 256)
                wspec((1, 2 * RNN_H)),                                 # B0       (1, 256)
                wspec((2 * RNN_H, 2 * RNN_H)),                         # W1       (256, 256)
                wspec((1, 2 * RNN_H)),                                 # B1       (1, 256)
                wspec((2 * RNN_H, NCLS_PAD)),                          # Wout_eff (256, 128)
                wspec((1, NCLS_PAD)),                                  # bout_eff (1, 128)
            ],
            out_specs=pl.BlockSpec((tb, NCLS_PAD), lambda i: (i, 0)),  # lane-dense output
        ),
        compiler_params=pltpu.CompilerParams(
            dimension_semantics=("parallel",),
            vmem_limit_bytes=32 * 1024 * 1024,
        ),
    )(h1, fused["w0"], fused["b0"], fused["w1"], fused["b1"], fused["wout"], fused["bout"])
    return out[:B, :NCLS]


def init_params(key):
    """Deterministic init mirroring PyTorch RNN/Linear shapes (uniform +-1/sqrt(128)).

    Weights stored pre-transposed as (in_features, out_features); RNN ih and hh biases are
    folded together (W_hh @ h_prev == 0 because seq_len==1 and h0==0).
    """
    bound = 1.0 / math.sqrt(RNN_H)
    ks = jax.random.split(key, 18)

    def u(k, shape):
        return jax.random.uniform(k, shape, jnp.float32, -bound, bound)

    p = {}
    # layer 0 (input size HID), forward / reverse
    p["w0f"] = u(ks[0], (RNN_H, HID)).T                 # (HID, 128)
    p["w0b"] = u(ks[1], (RNN_H, HID)).T
    p["b0f"] = (u(ks[2], (RNN_H,)) + u(ks[3], (RNN_H,))).reshape(1, RNN_H)   # b_ih + b_hh
    p["b0b"] = (u(ks[4], (RNN_H,)) + u(ks[5], (RNN_H,))).reshape(1, RNN_H)
    # layer 1 (input size 2*128), forward / reverse
    p["w1f"] = u(ks[6], (RNN_H, 2 * RNN_H)).T           # (256, 128)
    p["w1b"] = u(ks[7], (RNN_H, 2 * RNN_H)).T
    p["b1f"] = (u(ks[8], (RNN_H,)) + u(ks[9], (RNN_H,))).reshape(1, RNN_H)
    p["b1b"] = (u(ks[10], (RNN_H,)) + u(ks[11], (RNN_H,))).reshape(1, RNN_H)
    # output Linear(128, 10)
    p["wout"] = u(ks[12], (NCLS, RNN_H)).T              # (128, 10)
    p["bout"] = u(ks[13], (NCLS,)).reshape(1, NCLS)
    return p


def fuse_params(p):
    """One-time host-side fusion: 3 weights / 3 biases; pool folded into the output Linear;
    output lane-padded 10 -> 128 for unmasked full-lane stores."""
    fused = {}
    fused["w0"] = jnp.concatenate([p["w0f"], p["w0b"]], axis=1)      # (32, 256)
    fused["b0"] = jnp.concatenate([p["b0f"], p["b0b"]], axis=1)      # (1, 256)
    fused["w1"] = jnp.concatenate([p["w1f"], p["w1b"]], axis=1)      # (256, 256)
    fused["b1"] = jnp.concatenate([p["b1f"], p["b1b"]], axis=1)      # (1, 256)
    # AvgPool((1,2)) then Linear == Linear with each wout row duplicated for the pair, * 0.5:
    # logits[:, c] = sum_j 0.5*(y1[:,2j]+y1[:,2j+1]) * wout[j, c]
    wout = 0.5 * jnp.repeat(p["wout"], 2, axis=0)                    # (256, 10)
    # Lane padding 10 -> 128: zero weight columns + hugely negative bias so padded logits
    # contribute exactly 0 probability mass to the softmax.
    fused["wout"] = jnp.pad(wout, ((0, 0), (0, NCLS_PAD - NCLS)))                       # (256, 128)
    fused["bout"] = jnp.pad(p["bout"], ((0, 0), (0, NCLS_PAD - NCLS)),
                            constant_values=NEG_BIG)                                    # (1, 128)
    return fused


def reference_forward(h1, p):
    """Pure-JAX reference of the PyTorch forward (for verification)."""
    h0f = jnp.tanh(h1 @ p["w0f"] + p["b0f"])
    h0b = jnp.tanh(h1 @ p["w0b"] + p["b0b"])
    y0 = jnp.concatenate([h0f, h0b], axis=-1)
    h1f = jnp.tanh(y0 @ p["w1f"] + p["b1f"])
    h1b = jnp.tanh(y0 @ p["w1b"] + p["b1b"])
    y1 = jnp.concatenate([h1f, h1b], axis=-1)           # RNN output (B, 256)
    pooled = 0.5 * (y1[:, 0::2] + y1[:, 1::2])          # AvgPool2d((1,2), stride=2)
    logits = pooled @ p["wout"] + p["bout"]
    return jax.nn.softmax(logits, axis=-1)


if __name__ == "__main__":
    key = jax.random.PRNGKey(0)
    k_param, k_data = jax.random.split(key)
    params = init_params(k_param)
    fused = fuse_params(params)

    B = 32
    h1 = jax.random.normal(k_data, (B, HID), dtype=jnp.float32)

    out = rnn_detect_forward(h1, fused)                 # adaptive tb -> 2 grid steps here
    out = jax.block_until_ready(out)

    ref = reference_forward(h1, params)
    assert out.shape == (B, NCLS)
    assert jnp.allclose(out, ref, atol=1e-5, rtol=1e-5), (out, ref)
    assert jnp.allclose(jnp.sum(out, axis=-1), 1.0, atol=1e-5)

    print("KERNEL_OK")
</pallas_src>

<mosaic_0001>
module attributes {stable_mosaic.version = 11 : i64} {
  func.func @rnn_detect_kernel(%arg0: i32, %arg1: memref<16x32xf32, #tpu.memory_space<vmem>>, %arg2: memref<32x256xf32, #tpu.memory_space<vmem>>, %arg3: memref<1x256xf32, #tpu.memory_space<vmem>>, %arg4: memref<256x256xf32, #tpu.memory_space<vmem>>, %arg5: memref<1x256xf32, #tpu.memory_space<vmem>>, %arg6: memref<256x128xf32, #tpu.memory_space<vmem>>, %arg7: memref<1x128xf32, #tpu.memory_space<vmem>>, %arg8: memref<16x128xf32, #tpu.memory_space<vmem>>) attributes {dimension_semantics = [#tpu.dimension_semantics<parallel>], iteration_bounds = array<i64: 2>, scalar_prefetch = 0 : i64, scratch_operands = 0 : i64, tpu.core_type = #tpu.core_type<tc>, window_params = [{transform_indices = @transform_0, window_bounds = array<i64: 16, 32>}, {pipeline_mode = #tpu.pipeline_mode<synchronous>, transform_indices = @transform_1, window_bounds = array<i64: 32, 256>}, {pipeline_mode = #tpu.pipeline_mode<synchronous>, transform_indices = @transform_2, window_bounds = array<i64: 1, 256>}, {pipeline_mode = #tpu.pipeline_mode<synchronous>, transform_indices = @transform_3, window_bounds = array<i64: 256, 256>}, {pipeline_mode = #tpu.pipeline_mode<synchronous>, transform_indices = @transform_4, window_bounds = array<i64: 1, 256>}, {pipeline_mode = #tpu.pipeline_mode<synchronous>, transform_indices = @transform_5, window_bounds = array<i64: 256, 128>}, {pipeline_mode = #tpu.pipeline_mode<synchronous>, transform_indices = @transform_6, window_bounds = array<i64: 1, 128>}, {transform_indices = @transform_7, window_bounds = array<i64: 16, 128>}]} {
    %c0 = arith.constant 0 : index
    %c0_0 = arith.constant 0 : index
    %0 = vector.load %arg1[%c0, %c0_0] : memref<16x32xf32, #tpu.memory_space<vmem>>, vector<16x32xf32>
    %c0_1 = arith.constant 0 : index
    %c0_2 = arith.constant 0 : index
    %1 = vector.load %arg2[%c0_1, %c0_2] : memref<32x256xf32, #tpu.memory_space<vmem>>, vector<32x256xf32>
    %cst = arith.constant dense<0.000000e+00> : vector<16x256xf32>
    %2 = tpu.matmul %0, %1, %cst {dimension_numbers = #tpu.dot_dimension_numbers<[1], [0], [0], [1], [0, 0, 1, 1], [], []>} : vector<16x32xf32>, vector<32x256xf32>, vector<16x256xf32> -> vector<16x256xf32>
    %c0_3 = arith.constant 0 : index
    %c0_4 = arith.constant 0 : index
    %3 = vector.load %arg3[%c0_3, %c0_4] : memref<1x256xf32, #tpu.memory_space<vmem>>, vector<1x256xf32>
    %4 = vector.broadcast %3 : vector<1x256xf32> to vector<16x256xf32>
    %5 = arith.addf %2, %4 : vector<16x256xf32>
    %6 = math.tanh %5 : vector<16x256xf32>
    %c0_5 = arith.constant 0 : index
    %c0_6 = arith.constant 0 : index
    %7 = vector.load %arg4[%c0_5, %c0_6] : memref<256x256xf32, #tpu.memory_space<vmem>>, vector<256x256xf32>
    %cst_7 = arith.constant dense<0.000000e+00> : vector<16x256xf32>
    %8 = tpu.matmul %6, %7, %cst_7 {dimension_numbers = #tpu.dot_dimension_numbers<[1], [0], [0], [1], [0, 0, 1, 1], [], []>} : vector<16x256xf32>, vector<256x256xf32>, vector<16x256xf32> -> vector<16x256xf32>
    %c0_8 = arith.constant 0 : index
    %c0_9 = arith.constant 0 : index
    %9 = vector.load %arg5[%c0_8, %c0_9] : memref<1x256xf32, #tpu.memory_space<vmem>>, vector<1x256xf32>
    %10 = vector.broadcast %9 : vector<1x256xf32> to vector<16x256xf32>
    %11 = arith.addf %8, %10 : vector<16x256xf32>
    %12 = math.tanh %11 : vector<16x256xf32>
    %c0_10 = arith.constant 0 : index
    %c0_11 = arith.constant 0 : index
    %13 = vector.load %arg6[%c0_10, %c0_11] : memref<256x128xf32, #tpu.memory_space<vmem>>, vector<256x128xf32>
    %cst_12 = arith.constant dense<0.000000e+00> : vector<16x128xf32>
    %14 = tpu.matmul %12, %13, %cst_12 {dimension_numbers = #tpu.dot_dimension_numbers<[1], [0], [0], [1], [0, 0, 1, 1], [], []>} : vector<16x256xf32>, vector<256x128xf32>, vector<16x128xf32> -> vector<16x128xf32>
    %c0_13 = arith.constant 0 : index
    %c0_14 = arith.constant 0 : index
    %15 = vector.load %arg7[%c0_13, %c0_14] : memref<1x128xf32, #tpu.memory_space<vmem>>, vector<1x128xf32>
    %16 = vector.broadcast %15 : vector<1x128xf32> to vector<16x128xf32>
    %17 = arith.addf %14, %16 : vector<16x128xf32>
    %cst_15 = arith.constant dense<0xFF800000> : vector<16xf32>
    %18 = vector.multi_reduction <maximumf>, %17, %cst_15 [1] : vector<16x128xf32> to vector<16xf32>
    %19 = vector.shape_cast %18 : vector<16xf32> to vector<16x1xf32>
    %20 = vector.broadcast %19 : vector<16x1xf32> to vector<16x128xf32>
    %21 = arith.subf %17, %20 : vector<16x128xf32>
    %22 = math.exp %21 : vector<16x128xf32>
    %cst_16 = arith.constant dense<0.000000e+00> : vector<16xf32>
    %23 = vector.multi_reduction <add>, %22, %cst_16 [1] : vector<16x128xf32> to vector<16xf32>
    %24 = vector.shape_cast %23 : vector<16xf32> to vector<16x1xf32>
    %25 = tpu.reciprocal %24 : vector<16x1xf32> -> vector<16x1xf32>
    %26 = vector.broadcast %25 : vector<16x1xf32> to vector<16x128xf32>
    %27 = arith.mulf %22, %26 : vector<16x128xf32>
    %c0_17 = arith.constant 0 : index
    %c0_18 = arith.constant 0 : index
    %28 = vector.load %arg8[%c0_17, %c0_18] : memref<16x128xf32, #tpu.memory_space<vmem>>, vector<16x128xf32>
    tpu.vector_store %arg8[%c0_17, %c0_18], %27 {strides = array<i32>} : memref<16x128xf32, #tpu.memory_space<vmem>>, vector<16x128xf32>,
    return
  }
  func.func @transform_0(%arg0: i32) -> (i32, i32) {
    %c0_i32 = arith.constant 0 : i32
    %c0_i32_0 = arith.constant 0 : i32
    return %arg0, %c0_i32 : i32, i32
  }
  func.func @transform_1(%arg0: i32) -> (i32, i32) {
    %c0_i32 = arith.constant 0 : i32
    %c0_i32_0 = arith.constant 0 : i32
    %c0_i32_1 = arith.constant 0 : i32
    return %c0_i32, %c0_i32_0 : i32, i32
  }
  func.func @transform_2(%arg0: i32) -> (i32, i32) {
    %c0_i32 = arith.constant 0 : i32
    %c0_i32_0 = arith.constant 0 : i32
    %c0_i32_1 = arith.constant 0 : i32
    return %c0_i32, %c0_i32_0 : i32, i32
  }
  func.func @transform_3(%arg0: i32) -> (i32, i32) {
    %c0_i32 = arith.constant 0 : i32
    %c0_i32_0 = arith.constant 0 : i32
    %c0_i32_1 = arith.constant 0 : i32
    return %c0_i32, %c0_i32_0 : i32, i32
  }
  func.func @transform_4(%arg0: i32) -> (i32, i32) {
    %c0_i32 = arith.constant 0 : i32
    %c0_i32_0 = arith.constant 0 : i32
    %c0_i32_1 = arith.constant 0 : i32
    return %c0_i32, %c0_i32_0 : i32, i32
  }
  func.func @transform_5(%arg0: i32) -> (i32, i32) {
    %c0_i32 = arith.constant 0 : i32
    %c0_i32_0 = arith.constant 0 : i32
    %c0_i32_1 = arith.constant 0 : i32
    return %c0_i32, %c0_i32_0 : i32, i32
  }
  func.func @transform_6(%arg0: i32) -> (i32, i32) {
    %c0_i32 = arith.constant 0 : i32
    %c0_i32_0 = arith.constant 0 : i32
    %c0_i32_1 = arith.constant 0 : i32
    return %c0_i32, %c0_i32_0 : i32, i32
  }
  func.func @transform_7(%arg0: i32) -> (i32, i32) {
    %c0_i32 = arith.constant 0 : i32
    %c0_i32_0 = arith.constant 0 : i32
    return %arg0, %c0_i32 : i32, i32
  }
}

</mosaic_0001>

<bundles_post_ra>
// kernel: tpu_custom_call.1
= control target key start
LH: loop header
LB: loop body
LE: loop exit
PB: predicated region body
PF: predicated region fallthrough
CT: control target
= control target key end

     0   :  { %12 = vsyncpa [#allocation3], 0  ;;  %s1661_s0 = inlined_call_operand.hbm [shape: f32[32,32], index: 0, kind: input, shape index: {}]   ;;  %s1662_s1 = inlined_call_operand.hbm [shape: f32[32,256], index: 1, kind: input, shape index: {}]   ;;  %s1663_s2 = inlined_call_operand.vmem [shape: f32[1,256], index: 2, kind: input, shape index: {}]   ;;  %s1664_s3 = inlined_call_operand.hbm [shape: f32[256,256], index: 3, kind: input, shape index: {}]   ;;  %s1665_s4 = inlined_call_operand.vmem [shape: f32[1,256], index: 4, kind: input, shape index: {}]   ;;  %s1666_s5 = inlined_call_operand.hbm [shape: f32[256,128], index: 5, kind: input, shape index: {}]   ;;  %s1667_s6 = inlined_call_operand.vmem [shape: f32[1,128], index: 6, kind: input, shape index: {}]   ;;  %s1668_s7 = inlined_call_operand.hbm [shape: f32[32,128], index: 7, kind: output, shape index: {}]  }
   0x1   :  { %14 = vsyncpa [#allocation3 + $0x1], 0 }
   0x2   :  { %15 = vsyncpa [#allocation6], 0 }
   0x3   :  { %16 = vsyncpa [#allocation9], 0 }
   0x4   :  { %17 = vsyncpa [#allocation4], 0 }
   0x5   :  { %19 = vsyncpa [#allocation4 + $0x1], 0  ;;  %s1377_s24 = smov 0   ;;  %s1379_s25 = smov 0  }
   0x6   :  { %s1381_s26 = smov 0   ;;  %s1383_s27 = smov 0  }
   0x7 LB: > { %s1398_s28 = sadd.s32 4294967295, %s1323_s27   ;;  %s860_s29 = sadd.s32 4294967294, %s1323_s27   ;;  %s1323_s27 = sphi %s1383_s27, %s1694_s27   ;;  %s1319_s26 = sphi %s1381_s26, %s1693_s26   ;;  %s1315_s25 = sphi %s1379_s25, %s1692_s25   ;;  %s1311_s24 = sphi %s1377_s24, %s1691_s24  }
   0x8   : > { %p45_p0 = scmp.ne.s32.totalorder %s1315_s25, %s1311_s24  ;;  %p1669_p1 = scmp.eq.s32.totalorder %s1398_s28, 0 }
   0x9   : > { %p201_p3 = scmp.eq.s32.totalorder %s860_s29, 1  ;;  %p861_p5 = scmp.ge.s32.totalorder %s1323_s27, 1 }
   0xa   : > { %p1407_p4 = por %p1669_p1, %p45_p0  ;;  %p208_p7 = scmp.lt.s32.totalorder %s1323_s27, 3 }
   0xb   : > { %p1412_p6 = por %p201_p3, %p45_p0  ;;  %s1325_s10 = smov [#allocation5]  }
   0xc   : > { %s1673_s30 = scalar_select %p1407_p4, 1, 0 }
   0xd   : > { %s1674_s8 = scalar_select %p1412_p6, 1, 0 }
   0xe   : > { %p1417_p8 = pnand %p861_p5, %p208_p7  ;;  %s220_s11 = sshll.u32 %s1325_s10, 4  ;;  %s1421_s11 = int_to_ptr.vmem [resolvable:$true] %s220_s11 }
   0xf   : > { %1675 = sst [smem:[#allocation15_spill]] %s1674_s8  ;;  %s1326_s13 = smov [#allocation7]  }
  0x10   : > { %s1676_s9 = scalar_select %p1417_p8, 1, 0 }
  0x11   : > { %p1043_p9 = pneg %p1417_p8  ;;  %s236_s14 = sshll.u32 %s1326_s13, 4  ;;  %s1432_s14 = int_to_ptr.vmem [resolvable:$true] %s236_s14 }
  0x12   : > { %s1327_s15 = smov [#allocation8]   ;;  %s1135_s19 = scalar_lea.hbm %s1662_s1, 1024 }
  0x13   : > { %p1428_p11 = pnand %p1043_p9, %p1669_p1  ;;  %s1434_s16 = sshll.u32 %s1327_s15, 4  ;;  %s253_s16 = int_to_ptr.vmem [resolvable:$true] %s1434_s16 }
  0x14   : > { %p1136_p12 = scmp.ne.s32.totalorder %s1662_s1, %s1135_s19  ;;  %p1142_p5 = scmp.lt.u32.totalorder %s1135_s19, %s1662_s1 }
  0x15   : > { %p1444_p13 = pneg %p1428_p11 }
  0x17   : > { %p1138_p0 = pnand %p1444_p13, %p1136_p12 }
  0x19   : > { %p1139_p3 = pneg %p1138_p0 }
  0x1b   : > { %p1144_p7 = pnand %p1142_p5, %p1139_p3 }
  0x1d   : > { %1147 = shalt.err (!%p1144_p7)
}
  0x1e   : > { %s1148_s10 = scalar_lea.vmem %s1421_s11, 1024  ;;  %p1156_p2 = scmp.lt.s32.totalorder %s1421_s11, %s1421_s11 }
  0x1f   : > { %p1149_p9 = scmp.ne.s32.totalorder %s1421_s11, %s1148_s10  ;;  %p1157_p6 = scmp.lt.s32.totalorder %s1148_s10, %s1148_s10 }
  0x21   : > { %p1151_p10 = pnand %p1149_p9, %p1444_p13  ;;  %p1158_p12 = por %p1157_p6, %p1156_p2 }
  0x23   : > { %p1152_p1 = pneg %p1151_p10 }
  0x25   : > { %p1159_p0 = pnand %p1158_p12, %p1152_p1 }
  0x27   : > { %1162 = shalt.err (!%p1159_p0)
}
  0x28   : > { %s1328_s13 = smov 256   ;;  %s1329_s15 = smov 16  }
  0x29   : > { %1046 = dma.hbm_to_vmem [thread:$0]  (!%p1428_p11), %s1662_s1, 1024, %s1421_s11, [#allocation6], %s1328_s13, %s1328_s13, %s1329_s15  }
  0x2a   : > { %s1163_s21 = scalar_lea.hbm %s1664_s3, 8192 }
  0x2b   : > { %p1164_p2 = scmp.ne.s32.totalorder %s1664_s3, %s1163_s21  ;;  %p1170_p10 = scmp.lt.u32.totalorder %s1163_s21, %s1664_s3 }
  0x2d   : > { %p1166_p1 = pnand %p1164_p2, %p1444_p13 }
  0x2f   : > { %p1167_p6 = pneg %p1166_p1 }
  0x31   : > { %p1172_p3 = pnand %p1170_p10, %p1167_p6 }
  0x33   : > { %1175 = shalt.err (!%p1172_p3)
}
  0x34   : > { %s1176_s11 = scalar_lea.vmem %s1432_s14, 8192  ;;  %p1184_p12 = scmp.lt.s32.totalorder %s1432_s14, %s1432_s14 }
  0x35   : > { %p1177_p5 = scmp.ne.s32.totalorder %s1432_s14, %s1176_s11  ;;  %p1185_p0 = scmp.lt.s32.totalorder %s1176_s11, %s1176_s11 }
  0x37   : > { %p1179_p7 = pnand %p1177_p5, %p1444_p13  ;;  %p1186_p2 = por %p1185_p0, %p1184_p12 }
  0x39   : > { %p1180_p9 = pneg %p1179_p7 }
  0x3b   : > { %p1187_p1 = pnand %p1186_p2, %p1180_p9 }
  0x3d   : > { %1190 = shalt.err (!%p1187_p1)
}
  0x3e   : > { %1049 = dma.hbm_to_vmem [thread:$0]  (!%p1428_p11), %s1664_s3, 8192, %s1432_s14, [#allocation6], %s1328_s13, %s1328_s13, %s1329_s15  }
  0x3f   : > { %s1191_s20 = scalar_lea.hbm %s1666_s5, 4096 }
  0x40   : > { %p1192_p6 = scmp.ne.s32.totalorder %s1666_s5, %s1191_s20  ;;  %p1198_p5 = scmp.lt.u32.totalorder %s1191_s20, %s1666_s5 }
  0x42   : > { %p1194_p10 = pnand %p1192_p6, %p1444_p13 }
  0x44   : > { %p1195_p3 = pneg %p1194_p10 }
  0x46   : > { %p1200_p7 = pnand %p1198_p5, %p1195_p3 }
  0x48   : > { %1203 = shalt.err (!%p1200_p7)
}
  0x49   : > { %s1204_s11 = scalar_lea.vmem %s253_s16, 4096  ;;  %p1212_p2 = scmp.lt.s32.totalorder %s253_s16, %s253_s16 }
  0x4a   : > { %p1205_p9 = scmp.ne.s32.totalorder %s253_s16, %s1204_s11  ;;  %p1213_p1 = scmp.lt.s32.totalorder %s1204_s11, %s1204_s11 }
  0x4c   : > { %p1207_p12 = pnand %p1205_p9, %p1444_p13  ;;  %p1214_p4 = por %p1213_p1, %p1212_p2 }
  0x4e   : > { %p1208_p0 = pneg %p1207_p12 }
  0x50   : > { %p1215_p8 = pnand %p1214_p4, %p1208_p0 }
  0x52   : > { %1218 = shalt.err (!%p1215_p8)
}
  0x53   : > { %s1330_s14 = smov 128   ;;  %s1331_s22 = smov 8  }
  0x54   : > { %1052 = dma.hbm_to_vmem [thread:$0]  (!%p1428_p11), %s1666_s5, 4096, %s253_s16, [#allocation9], %s1330_s14, %s1330_s14, %s1331_s22  }
  0x55   : > { %s1511_s8 = sadd.s32 1, %s1323_s27   ;;  %s32_s18 = sadd.s32 1, %s1319_s26 }
  0x56   : > { %s29_s17 = ssub.s32 %s1323_s27, %s1511_s8  ;;  %p39_p8 = scmp.ne.s32.totalorder %s1319_s26, %s1315_s25 }
  0x57   : > { %p30_p4 = scmp.eq.s32.totalorder %s29_s17, 0  ;;  %p40_p13 = scmp.eq.s32.totalorder %s1323_s27, 0 }
  0x58   : > { %p1064_p6 = scmp.lt.s32.totalorder %s1323_s27, 2  ;;  %p1679_p3 = scmp.eq.s32.totalorder %s1398_s28, 1 }
  0x59   : > { %s1521_s19 = scalar_select %p30_p4, %s1319_s26, %s32_s18  }
  0x5a   : > { %p41_p10 = por %p40_p13, %p39_p8  ;;  %p1525_p5 = por %p1679_p3, %p39_p8 }
  0x5b   : > { %s269_s20 = sand.u32 1, %s1319_s26   ;;  %s883_s21 = sshll.u32 %s1323_s27, 8 }
  0x5c   : > { %s866_s16 = sshll.u32 %s269_s20, 4  ;;  %s1534_s10 = scalar_lea.hbm %s1661_s0, %s883_s21 }
  0x5d   : > { %s273_s11 = scalar_lea.vmem [#allocation2], %s866_s16  ;;  %p1536_p11 = pnand %p1064_p6, %p41_p10 }
  0x5e   : > { %s280_s13 = sshll.u32 %s273_s11, 4  ;;  %s1542_s17 = scalar_lea.sflag [#allocation3], %s269_s20  ;;  %s1540_s13 = int_to_ptr.vmem [resolvable:$true] %s280_s13 }
  0x5f   : > { %s1219_s18 = scalar_lea.hbm %s1534_s10, 256  ;;  %p1221_p9 = pneg %p1536_p11 }
  0x60   : > { %p1220_p7 = scmp.ne.s32.totalorder %s1534_s10, %s1219_s18  ;;  %s1224_s23 = scalar_lea.hbm %s1661_s0, 512 }
  0x61   : > { %p1225_p2 = scmp.lt.u32.totalorder %s1534_s10, %s1661_s0  ;;  %p1226_p1 = scmp.lt.u32.totalorder %s1224_s23, %s1219_s18 }
  0x62   : > { %p1222_p12 = pnand %p1221_p9, %p1220_p7  ;;  %p1228_p8 = scmp.lt.u32.totalorder %s1219_s18, %s1534_s10 }
  0x63   : > { %p1227_p4 = por %p1226_p1, %p1225_p2 }
  0x64   : > { %p1223_p0 = pneg %p1222_p12 }
  0x65   : > { %p1229_p13 = por %p1228_p8, %p1227_p4 }
  0x67   : > { %p1230_p6 = pnand %p1229_p13, %p1223_p0 }
  0x69   : > { %1233 = shalt.err (!%p1230_p6)
}
  0x6a   : > { %s1234_s20 = scalar_lea.vmem %s1540_s13, 256  ;;  %s1332_s21 = smov [#allocation2]  }
  0x6b   : > { %p1235_p10 = scmp.ne.s32.totalorder %s1540_s13, %s1234_s20  ;;  %s1239_s16 = sshll.u32 %s1332_s21, 4  ;;  %s1240_s16 = int_to_ptr.vmem [resolvable:$false] %s1239_s16 }
  0x6c   : > { %s1241_s29 = scalar_lea.vmem %s1240_s16, 512  ;;  %p1242_p12 = scmp.lt.s32.totalorder %s1540_s13, %s1240_s16 }
  0x6d   : > { %p1237_p3 = pnand %p1235_p10, %p1221_p9  ;;  %p1243_p2 = scmp.lt.s32.totalorder %s1241_s29, %s1234_s20 }
  0x6f   : > { %p1238_p7 = pneg %p1237_p3  ;;  %p1244_p1 = por %p1243_p2, %p1242_p12 }
  0x71   : > { %p1245_p4 = pnand %p1244_p1, %p1238_p7 }
  0x73   : > { %1248 = shalt.err (!%p1245_p4)
}
  0x74   : > { %1056 = dma.hbm_to_vmem [thread:$0]  (!%p1536_p11), %s1534_s10, 256, %s1540_s13, %s1542_s17, %s1330_s14, %s1330_s14, %s1331_s22  }
  0x75   : > { %p1682_p9 = scmp.ne.s32.totalorder %s1676_s9, 0 }
  0x76   : > { %s1576_s18 = sand.u32 (!%p1682_p9), 1, %s1315_s25   ;;  %p1683_p0 = scmp.ne.s32.totalorder (!%p1682_p9), %s1673_s30, 0 }
  0x77   : > { %292 = sbr.rel (%p1682_p9) target bundleno = 1147 (0x47b), region = 48  ;;  %s870_s23 = sshll.u32 (!%p1682_p9), %s1576_s18, 4 }
  0x78   : > { %s295_s11 = scalar_lea.sflag (!%p1682_p9), [#allocation3], %s1576_s18  ;;  %s1582_s15 = scalar_lea.vmem (!%p1682_p9), [#allocation2], %s870_s23 }
  0x7e   : > { %1294 = dma.done.wait (%p1683_p0), %s295_s11, 256  }
  0x7f   : > { %1296 = vsyncadd (%p1683_p0), %s295_s11, 4294967040  ;;  %p1684_p11 = scmp.eq.s32.totalorder %s1398_s28, 0 }
  0x81   : > { %1298 = dma.done.wait (%p1684_p11), [#allocation6], 9216   ;;  %p1685_p8 = pmov %p1684_p11 }
  0x83   : > { %1300 = vsyncadd (%p1685_p8), [#allocation6], 4294958080  ;;  %p1686_p13 = pmov %p1685_p8 }
  0x84   : > { %p1687_p6 = pmov %p1685_p8 }
  0x85   : > { %1302 = dma.done.wait (%p1686_p13), [#allocation9], 4096  }
  0x86   : > { %1304 = vsyncadd (%p1687_p6), [#allocation9], 4294963200  ;;  %v1333_v0 = vmov 0.0   ;;  %v346_v1 = vld [vmem:[#allocation5 + $0x8] sm:$0xff]  ;;  %v348_v2 = vld [vmem:[#allocation5 + $0x18] sm:$0xff]  ;;  %vm365_vm0 = vcmask 261120  }
  0x87   : > { %436 = vmatprep.mubr.f32.mxu0 %v1333_v0  ;;  %v345_v3 = vld [vmem:[#allocation5] sm:$0xff]  ;;  %v923_v4 = vpack.c.bf16 %v348_v2, %v346_v1  ;;  %v347_v5 = vld [vmem:[#allocation5 + $0x10] sm:$0xff]  ;;  %v350_v6 = vld [vmem:[#allocation5 + $0x28] sm:$0xff]  ;;  %s884_s17 = sshll.u32 %s1398_s28, 8  ;;  %s340_s20 = scalar_lea.vmem [#allocation10], %s870_s23 }
  0x88   : > { %v352_v7 = vld [vmem:[#allocation5 + $0x38] sm:$0xff]  ;;  %v925_v8 = vpack.c.bf16 %v347_v5, %v345_v3  ;;  %v349_v10 = vld [vmem:[#allocation5 + $0x20] sm:$0xff]  ;;  %v351_v11 = vld [vmem:[#allocation5 + $0x30] sm:$0xff]  ;;  %s758_s21 = sshll.u32 %s340_s20, 4  ;;  %s1615_s11 = scalar_lea.hbm %s1668_s7, %s884_s17  ;;  %s1617_s21 = int_to_ptr.vmem [resolvable:$true] %s758_s21 }
  0x89   : > { %v927_v9 = vpack.c.bf16 %v352_v7, %v350_v6  ;;  %924 = vmatprep.subr.bf16.mxu0 %v923_v4  ;;  %v454_v12 = vld [vmem:[#allocation7 + $0x8] sm:$0xff]  ;;  %v456_v13 = vld [vmem:[#allocation7 + $0x18] sm:$0xff]  ;;  %v929_v14 = vpack.c.bf16 %v351_v11, %v349_v10  ;;  %v453_v16 = vld [vmem:[#allocation7] sm:$0xff]  ;;  %s1249_s30 = scalar_lea.vmem %s1617_s21, 256  ;;  %s1334_s28 = smov [#allocation10]  }
  0x8a   : > { %926 = vmatpush1.bf16.msra.mxu0 %v925_v8  ;;  %v931_v15 = vpack.c.bf16 %v456_v13, %v454_v12  ;;  %v455_v17 = vld [vmem:[#allocation7 + $0x10] sm:$0xff]  ;;  %v458_v18 = vld [vmem:[#allocation7 + $0x28] sm:$0xff]  ;;  %v460_v20 = vld [vmem:[#allocation7 + $0x38] sm:$0xff]  ;;  %p1250_p10 = scmp.ne.s32.totalorder %s1617_s21, %s1249_s30  ;;  %s1253_s23 = sshll.u32 %s1334_s28, 4  ;;  %s1254_s23 = int_to_ptr.vmem [resolvable:$false] %s1253_s23 }
  0x8b   : > { %928 = vmatprep.subr.bf16.mxu0 %v927_v9  ;;  %v933_v19 = vpack.c.bf16 %v455_v17, %v453_v16  ;;  %v457_v21 = vld [vmem:[#allocation7 + $0x20] sm:$0xff]  ;;  %v459_v22 = vld [vmem:[#allocation7 + $0x30] sm:$0xff]  ;;  %v935_v23 = vpack.c.bf16 %v460_v20, %v458_v18  ;;  %v462_v24 = vld [vmem:[#allocation7 + $0x48] sm:$0xff]  ;;  %s1255_s9 = scalar_lea.vmem %s1254_s23, 512  ;;  %p1256_p12 = scmp.lt.s32.totalorder %s1617_s21, %s1254_s23 }
  0x8c   : > { %932 = vmatprep.subr.bf16.mxu1 %v931_v15  ;;  %v464_v25 = vld [vmem:[#allocation7 + $0x58] sm:$0xff]  ;;  %v937_v26 = vpack.c.bf16 %v459_v22, %v457_v21  ;;  %v343_v27 = vld [vmem:[%s1582_s15] sm:$0xff]  ;;  %v466_v31 = vld [vmem:[#allocation7 + $0x68] sm:$0xff]  ;;  %p1251_p3 = pnand %p1250_p10, %p1525_p5  ;;  %p1257_p2 = scmp.lt.s32.totalorder %s1255_s9, %s1249_s30 }
  0x8d   : > { %934 = vmatpush1.bf16.msra.mxu1 %v933_v19  ;;  %v939_v28 = vpack.c.bf16 %v464_v25, %v462_v24  ;;  %v461_v29 = vld [vmem:[#allocation7 + $0x40] sm:$0xff]  ;;  %v463_v30 = vld [vmem:[#allocation7 + $0x50] sm:$0xff]  ;;  %v468_v32 = vld [vmem:[#allocation7 + $0x78] sm:$0xff] }
  0x8e   : > { %930 = vmatpush1.bf16.msra.mxu0 %v929_v14  ;;  %936 = vmatprep.subr.bf16.mxu1 %v935_v23  ;;  %v941_v33 = vpack.c.bf16 %v463_v30, %v461_v29  ;;  %v344_v34 = vld [vmem:[%s1582_s15 + $0x8] sm:$0xff]  ;;  %v943_v35 = vpack.c.bf16 %v468_v32, %v466_v31  ;;  %v465_v36 = vld [vmem:[#allocation7 + $0x60] sm:$0xff]  ;;  %v467_v37 = vld [vmem:[#allocation7 + $0x70] sm:$0xff]  ;;  %s745_s15 = scalar_lea.sflag [#allocation4], %s1576_s18  ;;  %p1252_p7 = pneg %p1251_p3 }
  0x8f   : > { %v470_v38 = vld [vmem:[#allocation7 + $0x88] sm:$0xff]  ;;  %v472_v39 = vld [vmem:[#allocation7 + $0x98] sm:$0xff]  ;;  %v945_v40 = vpack.c.bf16 %v467_v37, %v465_v36  ;;  %v469_v42 = vld [vmem:[#allocation7 + $0x80] sm:$0xff]  ;;  %p1258_p1 = por %p1257_p2, %p1256_p12 }
  0x90   : > { %v947_v41 = vpack.c.bf16 %v472_v39, %v470_v38  ;;  %v471_v43 = vld [vmem:[#allocation7 + $0x90] sm:$0xff]  ;;  %v474_v44 = vld [vmem:[#allocation7 + $0xa8] sm:$0xff]  ;;  %v476_v45 = vld [vmem:[#allocation7 + $0xb8] sm:$0xff] }
  0x91   : > { %875 = vmatmul.mubr.msk.f32.vlgmr.msra.gmra.mrb[0].mxu0 %vm365_vm0, %v343_v27  ;;  %938 = vmatpush1.bf16.msra.mxu1 %v937_v26  ;;  %v949_v46 = vpack.c.bf16 %v471_v43, %v469_v42  ;;  %v951_v47 = vpack.c.bf16 %v476_v45, %v474_v44  ;;  %v473_v48 = vld [vmem:[#allocation7 + $0xa0] sm:$0xff]  ;;  %v475_v49 = vld [vmem:[#allocation7 + $0xb0] sm:$0xff]  ;;  %v478_v50 = vld [vmem:[#allocation7 + $0xc8] sm:$0xff]  ;;  %p1259_p4 = pnand %p1258_p1, %p1252_p7 }
  0x92   : > { %442 = vmatprep.mubr.f32.mxu0 %v1333_v0  ;;  %940 = vmatprep.subr.bf16.mxu1 %v939_v28  ;;  %v480_v51 = vld [vmem:[#allocation7 + $0xd8] sm:$0xff]  ;;  %v953_v52 = vpack.c.bf16 %v475_v49, %v473_v48  ;;  %v477_v54 = vld [vmem:[#allocation7 + $0xc0] sm:$0xff]  ;;  %v479_v55 = vld [vmem:[#allocation7 + $0xd0] sm:$0xff] }
  0x93   : > { %v955_v53 = vpack.c.bf16 %v480_v51, %v478_v50  ;;  %v482_v56 = vld [vmem:[#allocation7 + $0xe8] sm:$0xff]  ;;  %v484_v57 = vld [vmem:[#allocation7 + $0xf8] sm:$0xff]  ;;  %v957_v58 = vpack.c.bf16 %v479_v55, %v477_v54  ;;  %v481_v60 = vld [vmem:[#allocation7 + $0xe0] sm:$0xff] }
  0x94   : > { %v959_v59 = vpack.c.bf16 %v484_v57, %v482_v56  ;;  %v483_v61 = vld [vmem:[#allocation7 + $0xf0] sm:$0xff]  ;;  %v486_v62 = vld [vmem:[#allocation7 + $0x108] sm:$0xff]  ;;  %v488_v63 = vld [vmem:[#allocation7 + $0x118] sm:$0xff] }
  0x95   : > { %876 = vmatmul.mubr.msk.f32.gmra.mrb[2].mxu0 %vm365_vm0, %v344_v34  ;;  %942 = vmatpush1.bf16.msra.mxu1 %v941_v33  ;;  %v961_v0 = vpack.c.bf16 %v483_v61, %v481_v60  ;;  %v963_v1 = vpack.c.bf16 %v488_v63, %v486_v62  ;;  %v485_v2 = vld [vmem:[#allocation7 + $0x100] sm:$0xff]  ;;  %v487_v3 = vld [vmem:[#allocation7 + $0x110] sm:$0xff]  ;;  %v490_v4 = vld [vmem:[#allocation7 + $0x128] sm:$0xff] }
  0x96   : > { %944 = vmatprep.subr.bf16.mxu1 %v943_v35  ;;  %v492_v5 = vld [vmem:[#allocation7 + $0x138] sm:$0xff]  ;;  %v965_v6 = vpack.c.bf16 %v487_v3, %v485_v2  ;;  %v489_v8 = vld [vmem:[#allocation7 + $0x120] sm:$0xff]  ;;  %v491_v9 = vld [vmem:[#allocation7 + $0x130] sm:$0xff] }
  0x97   : > { %v967_v7 = vpack.c.bf16 %v492_v5, %v490_v4  ;;  %v494_v10 = vld [vmem:[#allocation7 + $0x148] sm:$0xff]  ;;  %v496_v11 = vld [vmem:[#allocation7 + $0x158] sm:$0xff]  ;;  %v969_v12 = vpack.c.bf16 %v491_v9, %v489_v8  ;;  %v493_v14 = vld [vmem:[#allocation7 + $0x140] sm:$0xff] }
  0x98   : > { %v971_v13 = vpack.c.bf16 %v496_v11, %v494_v10  ;;  %v495_v15 = vld [vmem:[#allocation7 + $0x150] sm:$0xff]  ;;  %v498_v16 = vld [vmem:[#allocation7 + $0x168] sm:$0xff]  ;;  %v500_v17 = vld [vmem:[#allocation7 + $0x178] sm:$0xff] }
  0x99   : > { %946 = vmatpush1.bf16.msra.mxu1 %v945_v40  ;;  %v973_v18 = vpack.c.bf16 %v495_v15, %v493_v14  ;;  %v975_v19 = vpack.c.bf16 %v500_v17, %v498_v16  ;;  %v497_v20 = vld [vmem:[#allocation7 + $0x160] sm:$0xff]  ;;  %v499_v21 = vld [vmem:[#allocation7 + $0x170] sm:$0xff]  ;;  %v502_v23 = vld [vmem:[#allocation7 + $0x188] sm:$0xff] }
  0x9a   : > { %948 = vmatprep.subr.bf16.mxu1 %v947_v41  ;;  %v977_v22 = vpack.c.bf16 %v499_v21, %v497_v20  ;;  %v504_v24 = vld [vmem:[#allocation7 + $0x198] sm:$0xff]  ;;  %v501_v26 = vld [vmem:[#allocation7 + $0x180] sm:$0xff]  ;;  %v503_v27 = vld [vmem:[#allocation7 + $0x190] sm:$0xff] }
  0x9b   : > { %v979_v25 = vpack.c.bf16 %v504_v24, %v502_v23  ;;  %v981_v28 = vpack.c.bf16 %v503_v27, %v501_v26  ;;  %v506_v29 = vld [vmem:[#allocation7 + $0x1a8] sm:$0xff]  ;;  %v508_v30 = vld [vmem:[#allocation7 + $0x1b8] sm:$0xff]  ;;  %v505_v32 = vld [vmem:[#allocation7 + $0x1a0] sm:$0xff] }
  0x9c   : > { %v983_v31 = vpack.c.bf16 %v508_v30, %v506_v29  ;;  %v507_v33 = vld [vmem:[#allocation7 + $0x1b0] sm:$0xff]  ;;  %v510_v35 = vld [vmem:[#allocation7 + $0x1c8] sm:$0xff]  ;;  %v512_v36 = vld [vmem:[#allocation7 + $0x1d8] sm:$0xff] }
  0x9d   : > { %950 = vmatpush1.bf16.msra.mxu1 %v949_v46  ;;  %v985_v34 = vpack.c.bf16 %v507_v33, %v505_v32  ;;  %v987_v37 = vpack.c.bf16 %v512_v36, %v510_v35  ;;  %v509_v38 = vld [vmem:[#allocation7 + $0x1c0] sm:$0xff]  ;;  %v511_v39 = vld [vmem:[#allocation7 + $0x1d0] sm:$0xff]  ;;  %v514_v41 = vld [vmem:[#allocation7 + $0x1e8] sm:$0xff] }
  0x9e   : > { %952 = vmatprep.subr.bf16.mxu1 %v951_v47  ;;  %v989_v40 = vpack.c.bf16 %v511_v39, %v509_v38  ;;  %v516_v42 = vld [vmem:[#allocation7 + $0x1f8] sm:$0xff]  ;;  %v513_v43 = vld [vmem:[#allocation7 + $0x1e0] sm:$0xff]  ;;  %v515_v45 = vld [vmem:[#allocation7 + $0x1f0] sm:$0xff] }
  0x9f   : > { %v991_v44 = vpack.c.bf16 %v516_v42, %v514_v41  ;;  %v993_v46 = vpack.c.bf16 %v515_v45, %v513_v43  ;;  %v626_v47 = vld [vmem:[#allocation8 + $0x80] sm:$0xff]  ;;  %v627_v48 = vld [vmem:[#allocation8 + $0x88] sm:$0xff]  ;;  %v612_v56 = vld [vmem:[#allocation8 + $0x10] sm:$0xff] }
  0xa0   : > { %v610_v49 = vld [vmem:[#allocation8] sm:$0xff]  ;;  %v995_v50 = vpack.c.bf16 %v627_v48, %v626_v47  ;;  %v611_v51 = vld [vmem:[#allocation8 + $0x8] sm:$0xff]  ;;  %v613_v57 = vld [vmem:[#allocation8 + $0x18] sm:$0xff] }
  0xa1   : > { %954 = vmatpush1.bf16.msra.mxu1 %v953_v52  ;;  %v628_v52 = vld [vmem:[#allocation8 + $0x90] sm:$0xff]  ;;  %v997_v54 = vpack.c.bf16 %v611_v51, %v610_v49  ;;  %v1001_v60 = vpack.c.bf16 %v613_v57, %v612_v56  ;;  %v614_v62 = vld [vmem:[#allocation8 + $0x20] sm:$0xff]  ;;  %v615_v63 = vld [vmem:[#allocation8 + $0x28] sm:$0xff] }
  0xa2   : > { %956 = vmatprep.subr.bf16.mxu1 %v955_v53  ;;  %v629_v53 = vld [vmem:[#allocation8 + $0x98] sm:$0xff]  ;;  %996 = vmatprep.subr.bf16.mxu0 %v995_v50  ;;  %v1005_v2 = vpack.c.bf16 %v615_v63, %v614_v62  ;;  %v616_v4 = vld [vmem:[#allocation8 + $0x30] sm:$0xff]  ;;  %v353_v10 = vld [vmem:[%s1663_s2] sm:$0x3] }
  0xa3   : > { %v999_v55 = vpack.c.bf16 %v629_v53, %v628_v52  ;;  %998 = vmatpush3.bf16.msra.mxu0 %v997_v54  ;;  %v617_v5 = vld [vmem:[#allocation8 + $0x38] sm:$0xff]  ;;  %v634_v26 = vld [vmem:[#allocation8 + $0xc0] sm:$0xff]  ;;  %v635_v27 = vld [vmem:[#allocation8 + $0xc8] sm:$0xff] }
  0xa4   : > { %v618_v29 = vld [vmem:[#allocation8 + $0x40] sm:$0xff]  ;;  %v619_v30 = vld [vmem:[#allocation8 + $0x48] sm:$0xff]  ;;  %v636_v32 = vld [vmem:[#allocation8 + $0xd0] sm:$0xff] }
  0xa5   : > { %958 = vmatpush1.bf16.msra.mxu1 %v957_v58  ;;  %v630_v58 = vld [vmem:[#allocation8 + $0xa0] sm:$0xff]  ;;  %1000 = vmatprep.subr.bf16.mxu0 %v999_v55  ;;  %v637_v33 = vld [vmem:[#allocation8 + $0xd8] sm:$0xff]  ;;  %v620_v35 = vld [vmem:[#allocation8 + $0x50] sm:$0xff] }
  0xa6   : > { %960 = vmatprep.subr.bf16.mxu1 %v959_v59  ;;  %v631_v59 = vld [vmem:[#allocation8 + $0xa8] sm:$0xff]  ;;  %v621_v36 = vld [vmem:[#allocation8 + $0x58] sm:$0xff]  ;;  %v638_v38 = vld [vmem:[#allocation8 + $0xe0] sm:$0xff] }
  0xa7   : > { %v1003_v61 = vpack.c.bf16 %v631_v59, %v630_v58  ;;  %1002 = vmatpush3.bf16.msra.mxu0 %v1001_v60  ;;  %v639_v39 = vld [vmem:[#allocation8 + $0xe8] sm:$0xff]  ;;  %v622_v41 = vld [vmem:[#allocation8 + $0x60] sm:$0xff]  ;;  %v641_v45 = vld [vmem:[#allocation8 + $0xf8] sm:$0xff] }
  0xa8   : > { %v623_v42 = vld [vmem:[#allocation8 + $0x68] sm:$0xff]  ;;  %v625_v48 = vld [vmem:[#allocation8 + $0x78] sm:$0xff]  ;;  %v517_v50 = vld [vmem:[%s1665_s4] sm:$0x3] }
  0xa9   : > { %962 = vmatpush1.bf16.msra.mxu1 %v961_v0  ;;  %v632_v0 = vld [vmem:[#allocation8 + $0xb0] sm:$0xff]  ;;  %1004 = vmatprep.subr.bf16.mxu0 %v1003_v61  ;;  %v1021_v43 = vpack.c.bf16 %v623_v42, %v622_v41 }
  0xaa   : > { %964 = vmatprep.subr.bf16.mxu1 %v963_v1  ;;  %v633_v1 = vld [vmem:[#allocation8 + $0xb8] sm:$0xff] }
  0xab   : > { %v1007_v3 = vpack.c.bf16 %v633_v1, %v632_v0  ;;  %1006 = vmatpush3.bf16.msra.mxu0 %v1005_v2 }
  0xad   : > { %966 = vmatpush1.bf16.msra.mxu1 %v965_v6  ;;  %v1009_v6 = vpack.c.bf16 %v617_v5, %v616_v4  ;;  %1008 = vmatprep.subr.bf16.mxu0 %v1007_v3  ;;  %v877_v3 = vld [vmem:[%s1667_s6] ss:$0 sm:$0xff] }
  0xae   : > { %968 = vmatprep.subr.bf16.mxu1 %v967_v7  ;;  %v355_v7 = vlaneseq }
  0xaf   : > { %1010 = vmatpush3.bf16.msra.mxu0 %v1009_v6 }
  0xb0   : > { %v356_v8 = vshrl.u32 %v355_v7, 7 }
  0xb1   : > { %970 = vmatpush1.bf16.msra.mxu1 %v969_v12 }
  0xb2   : > { %972 = vmatprep.subr.bf16.mxu1 %v971_v13  ;;  %v357_v9 = vsub.s32 0, %v356_v8  ;;  %v361_v11 = vsub.s32 1, %v356_v8 }
  0xb4   : > { %v358_v12 = vrot.slane %v353_v10, %v357_v9  ;;  %v362_v13 = vrot.slane %v353_v10, %v361_v11  ;;  %v522_v51 = vrot.slane %v517_v50, %v357_v9  ;;  %v526_v52 = vrot.slane %v517_v50, %v361_v11 }
  0xb5   : > { %974 = vmatpush1.bf16.msra.mxu1 %v973_v18 }
  0xb6   : > { %976 = vmatprep.subr.bf16.mxu1 %v975_v19 }
  0xb9   : > { %978 = vmatpush1.bf16.msra.mxu1 %v977_v22 }
  0xba   : > { %980 = vmatprep.subr.bf16.mxu1 %v979_v25 }
  0xbd   : > { %982 = vmatpush1.bf16.msra.mxu1 %v981_v28  ;;  %v1011_v28 = vpack.c.bf16 %v635_v27, %v634_v26 }
  0xbe   : > { %984 = vmatprep.subr.bf16.mxu1 %v983_v31  ;;  %v1013_v31 = vpack.c.bf16 %v619_v30, %v618_v29 }
  0xbf   : > { %1012 = vmatprep.subr.bf16.mxu0 %v1011_v28 }
  0xc0   : > { %1014 = vmatpush3.bf16.msra.mxu0 %v1013_v31 }
  0xc1   : > { %986 = vmatpush1.bf16.msra.mxu1 %v985_v34  ;;  %v1015_v34 = vpack.c.bf16 %v637_v33, %v636_v32 }
  0xc2   : > { %988 = vmatprep.subr.bf16.mxu1 %v987_v37  ;;  %v1017_v37 = vpack.c.bf16 %v621_v36, %v620_v35 }
  0xc3   : > { %1016 = vmatprep.subr.bf16.mxu0 %v1015_v34 }
  0xc4   : > { %1018 = vmatpush3.bf16.msra.mxu0 %v1017_v37 }
  0xc5   : > { %990 = vmatpush1.bf16.msra.mxu1 %v989_v40  ;;  %v1019_v40 = vpack.c.bf16 %v639_v39, %v638_v38 }
  0xc6   : > { %992 = vmatprep.subr.bf16.mxu1 %v991_v44  ;;  %v640_v44 = vld [vmem:[#allocation8 + $0xf0] sm:$0xff] }
  0xc7   : > { %1020 = vmatprep.subr.bf16.mxu0 %v1019_v40  ;;  %v1023_v47 = vpack.c.bf16 %v641_v45, %v640_v44 }
  0xc8   : > { %1022 = vmatpush3.bf16.msra.mxu0 %v1021_v43 }
  0xc9   : > { %994 = vmatpush1.bf16.msra.mxu1 %v993_v46  ;;  %v624_v46 = vld [vmem:[#allocation8 + $0x70] sm:$0xff]  ;;  %1024 = vmatprep.subr.bf16.mxu0 %v1023_v47 }
  0xca   : > { %v1025_v49 = vpack.c.bf16 %v625_v48, %v624_v46 }
  0xcc   : > { %1026 = vmatpush3.bf16.msra.mxu0 %v1025_v49 }
 0x164   : > { %v438_v14 = vpop.f32.mrb[0].mxu0 }
 0x165   : > { %v439_v15 = vadd.f32 %v438_v14, %v358_v12  ;;  %v440_v16 = vpop.f32.mrb[1].mxu0 }
 0x166   : > { %v441_v17 = vadd.f32 %v440_v16, %v362_v13 }
 0x168   : > { %1111 = vtanh.f32 %v441_v17  ;;  %v444_v18 = vpop.f32.mrb[2].mxu0 }
 0x169   : > { %1113 = vtanh.f32 %v439_v15  ;;  %v445_v19 = vadd.f32 %v444_v18, %v358_v12  ;;  %v446_v20 = vpop.f32.mrb[3].mxu0 }
 0x16a   : > { %v447_v21 = vadd.f32 %v446_v20, %v362_v13 }
 0x16c   : > { %1115 = vtanh.f32 %v447_v21 }
 0x16d   : > { %1117 = vtanh.f32 %v445_v19 }
 0x172   : > { %v1112_v22 = vpop.eup %1111 }
 0x173   : > { %v1114_v23 = vpop.eup %1113  ;;  %593 = vmatprep.mubr.f32.mxu1 %v1112_v22 }
 0x174   : > { %594 = vmatmul.mubr.f32.vlgmr.msra.gmra.mrb[0].mxu1 %v1114_v23 }
 0x176   : > { %v1116_v24 = vpop.eup %1115 }
 0x177   : > { %v1118_v25 = vpop.eup %1117  ;;  %599 = vmatprep.mubr.f32.mxu1 %v1116_v24 }
 0x178   : > { %600 = vmatmul.mubr.f32.gmra.mrb[2].mxu1 %v1118_v25 }
 0x247   : > { %v595_v53 = vpop.f32.mrb[0].mxu1 }
 0x248   : > { %v596_v54 = vadd.f32 %v595_v53, %v522_v51  ;;  %v597_v55 = vpop.f32.mrb[1].mxu1 }
 0x249   : > { %v598_v56 = vadd.f32 %v597_v55, %v526_v52 }
 0x24b   : > { %1119 = vtanh.f32 %v598_v56  ;;  %v601_v57 = vpop.f32.mrb[2].mxu1 }
 0x24c   : > { %1121 = vtanh.f32 %v596_v54  ;;  %v602_v58 = vadd.f32 %v601_v57, %v522_v51  ;;  %v603_v59 = vpop.f32.mrb[3].mxu1 }
 0x24d   : > { %v604_v60 = vadd.f32 %v603_v59, %v526_v52 }
 0x24f   : > { %1123 = vtanh.f32 %v604_v60 }
 0x250   : > { %1125 = vtanh.f32 %v602_v58 }
 0x255   : > { %v1120_v61 = vpop.eup %1119 }
 0x256   : > { %v1122_v62 = vpop.eup %1121  ;;  %713 = vmatprep.mubr.f32.mxu0 %v1120_v61 }
 0x257   : > { %714 = vmatmul.mubr.f32.vlgmr.msra.gmra.mrb[4].mxu0 %v1122_v62 }
 0x259   : > { %v1124_v63 = vpop.eup %1123 }
 0x25a   : > { %v1126_v0 = vpop.eup %1125  ;;  %718 = vmatprep.mubr.f32.mxu0 %v1124_v63 }
 0x25b   : > { %719 = vmatmul.mubr.f32.gmra.mrb[6].mxu0 %v1126_v0 }
 0x32a   : > { %v917_v1 = vpop.f32.mrb[4].mxu0 }
 0x32b   : > { %v918_v2 = vpop.f32.mrb[5].mxu0 }
 0x32c   : > { %v919_v4 = vadd.f32 %v918_v2, %v917_v1 }
 0x32e   : > { %v920_v5 = vpop.f32.mrb[6].mxu0  ;;  %v716_v6 = vadd.f32 %v919_v4, %v877_v3 }
 0x32f   : > { %v921_v7 = vpop.f32.mrb[7].mxu0 }
 0x330   : > { %v922_v8 = vadd.f32 %v921_v7, %v920_v5  ;;  %724 = vmax.xlane.f32.xlu0 %v716_v6 }
 0x332   : > { %v721_v9 = vadd.f32 %v922_v8, %v877_v3 }
 0x334   : > { %726 = vmax.xlane.f32.xlu0 %v721_v9 }
 0x3bd   : > { %v725_v10 = vpop.xlane.xlu0 %724 }
 0x3be   : > { %v728_v11 = vsub.f32 %v716_v6, %v725_v10 }
 0x3c0   : > { %v730_v12 = vmul.f32 1.442695, %v728_v11 }
 0x3c1   : > { %v727_v13 = vpop.xlane.xlu0 %726 }
 0x3c2   : > { %1127 = vpow2.f32 %v730_v12  ;;  %v729_v14 = vsub.f32 %v721_v9, %v727_v13 }
 0x3c4   : > { %v732_v15 = vmul.f32 1.442695, %v729_v14 }
 0x3c6   : > { %1129 = vpow2.f32 %v732_v15 }
 0x3cc   : > { %v1128_v16 = vpop.eup %1127 }
 0x3cd   : > { %734 = vadd.xlane.f32.xlu1 %v1128_v16 }
 0x3d0   : > { %v1130_v17 = vpop.eup %1129 }
 0x3d1   : > { %736 = vadd.xlane.f32.xlu1 %v1130_v17 }
 0x45a   : > { %v735_v18 = vpop.xlane.xlu1 %734 }
 0x45b   : > { %1131 = vrcp.f32 %v735_v18 }
 0x45e   : > { %v737_v19 = vpop.xlane.xlu1 %736 }
 0x45f   : > { %1133 = vrcp.f32 %v737_v19 }
 0x465   : > { %v1132_v20 = vpop.eup %1131 }
 0x466   : > { %v740_v21 = vmul.f32 %v1132_v20, %v1128_v16 }
 0x468   : > { %742 = vst [vmem:[%s340_s20] sm:$0xff] %v740_v21 }
 0x469   : > { %v1134_v22 = vpop.eup %1133 }
 0x46a   : > { %v741_v23 = vmul.f32 %v1134_v22, %v1130_v17 }
 0x46c   : > { %743 = vst [vmem:[%s340_s20 + $0x8] sm:$0xff] %v741_v23 }
 0x46d   : > { %1262 = shalt.err (!%p1259_p4)
}
 0x46e   : > { %s1263_s14 = scalar_lea.hbm %s1615_s11, 256  ;;  %s1267_s13 = scalar_lea.hbm %s1668_s7, 512 }
 0x46f   : > { %p1264_p9 = scmp.ne.s32.totalorder %s1615_s11, %s1263_s14  ;;  %p1268_p8 = scmp.lt.u32.totalorder %s1615_s11, %s1668_s7 }
 0x470   : > { %p1269_p13 = scmp.lt.u32.totalorder %s1267_s13, %s1263_s14  ;;  %p1271_p10 = scmp.lt.u32.totalorder %s1263_s14, %s1615_s11 }
 0x471   : > { %p1265_p0 = pnand %p1264_p9, %p1525_p5 }
 0x472   : > { %p1270_p6 = por %p1269_p13, %p1268_p8 }
 0x473   : > { %p1266_p11 = pneg %p1265_p0 }
 0x474   : > { %p1272_p3 = por %p1271_p10, %p1270_p6 }
 0x476   : > { %p1273_p7 = pnand %p1272_p3, %p1266_p11 }
 0x478   : > { %1276 = shalt.err (!%p1273_p7)
}
 0x479   : > { %s1335_s16 = smov 128   ;;  %s1336_s29 = smov 8  }
 0x47a   : > { %1041 = dma.vmem_to_hbm [thread:$0]  (%p1525_p5), %s1617_s21, 256, %s1615_s11, %s745_s15, %s1335_s16, %s1335_s16, %s1336_s29  }
 0x47b PF: > { %s1688_s30 = sld [smem:[#allocation15_spill]]  ;;  %s773_s28 = sand.u32 1, %s1311_s24  }
 0x47c   : > { %p1690_p2 = scmp.ge.s32.totalorder %s1323_s27, 2  ;;  %s774_s23 = scalar_lea.sflag [#allocation4], %s773_s28 }
 0x481   : > { %p1689_p12 = scmp.ne.s32.totalorder %s1688_s30, 0 }
 0x483   : > { %p1058_p1 = pnand %p1690_p2, %p1689_p12 }
 0x485   : > { %1306 = dma.done.wait (!%p1058_p1), %s774_s23, 256  }
 0x486   : > { %1308 = vsyncadd (!%p1058_p1), %s774_s23, 4294967040  ;;  %p22_p4 = scmp.ge.s32.totalorder %s1511_s8, 4   ;;  %s1691_s24 = smov %s1315_s25 }
 0x487   : > { %s1692_s25 = smov %s1319_s26  ;;  %s1693_s26 = smov %s1521_s19 }
 0x488   : > { %s1694_s27 = smov %s1511_s8  ;;  %24 = sbr.rel (!%p22_p4) target bundleno = 7 (0x7), region = 105 }
 0x48f   :  { %779 = vsyncpa [#allocation3], 1 }
 0x490   :  { %781 = vsyncpa [#allocation3 + $0x1], 1 }
 0x491   :  { %782 = vsyncpa [#allocation6], 1 }
 0x492   :  { %783 = vsyncpa [#allocation9], 1 }
 0x493   :  { %784 = vsyncpa [#allocation4], 1 }
 0x494   :  { %786 = vsyncpa [#allocation4 + $0x1], 1 }

</bundles_post_ra>
